<compile_context>
chip_gen: v7x
topology: tpu7x:2x2x1
jax: 0.10.0
libtpu: 0.0.40
codegen_flags: <defaults>
</compile_context>

<pallas_src>
import functools

import jax
import jax.numpy as jnp
import numpy as np
from jax import lax
from jax.experimental import pallas as pl
from jax.experimental.pallas import tpu as pltpu


# ----------------------------------------------------------------------------
# Fused kernel: one (batch, query-tile) step per grid point, all heads inside.
# ----------------------------------------------------------------------------
def _fused_mha_kernel(q_ref, k_ref, v_ref, mask_ref,
                      wq_ref, wk_ref, wv_ref, wf_ref, bf_ref,
                      o_ref, *rest, n_head, d_v, return_attn):
    if return_attn:
        attn_ref, ctx_scratch = rest
    else:
        (ctx_scratch,) = rest

    bf16 = jnp.bfloat16
    f32 = jnp.float32

    xq = q_ref[0]                        # (tq, d_model)  bf16
    xk = k_ref[0]                        # (n,  d_model)  bf16
    xv = v_ref[0]                        # (n,  d_model)  bf16
    mask = mask_ref[0] != 0              # (tq, n)        bool

    tq, d_model = xq.shape
    n = xk.shape[0]
    h = n_head

    # --- Head-batched projections -------------------------------------------
    # Heads ride the leading (major) axis so the MXU contracts over the full
    # d_model and the kernel never lane-slices activations per head.
    bmm = (((2,), (1,)), ((0,), (0,)))   # (h, m, k) @ (h, k, n) -> (h, m, n)
    qh = lax.dot_general(jnp.broadcast_to(xq[None], (h, tq, d_model)), wq_ref[...],
                         bmm, preferred_element_type=f32).astype(bf16)   # (h, tq, d_k)
    kh = lax.dot_general(jnp.broadcast_to(xk[None], (h, n, d_model)), wk_ref[...],
                         bmm, preferred_element_type=f32).astype(bf16)   # (h, n, d_k)
    vh = lax.dot_general(jnp.broadcast_to(xv[None], (h, n, d_model)), wv_ref[...],
                         bmm, preferred_element_type=f32).astype(bf16)   # (h, n, d_v)

    # --- Scores + masked softmax, all heads at once --------------------------
    # 1/temperature was folded into wq on the host (w_qs has no bias => exact).
    s = lax.dot_general(qh, kh, (((2,), (2,)), ((0,), (0,))),
                        preferred_element_type=f32)                       # (h, tq, n)
    s = jnp.where(mask[None], jnp.float32(-10000.0), s)                   # masked_fill

    m = jnp.max(s, axis=-1, keepdims=True)
    e = jnp.exp(s - m)
    z = jnp.sum(e, axis=-1, keepdims=True)
    a = e * pl.reciprocal(z, approx=True)                                 # softmax

    if return_attn:
        attn_ref[0] = a.astype(attn_ref.dtype)

    # --- attn @ V (head-batched), then ONE wide output projection ------------
    ctx = lax.dot_general(a.astype(bf16), vh, (((2,), (1,)), ((0,), (0,))),
                          preferred_element_type=f32)                     # (h, tq, d_v)

    # Gather heads into a lane-contiguous (tq, h*d_v) scratch so the final
    # projection is a single full-width matmul (no per-head 8-wide contractions,
    # no serial accumulator chain).
    for hh in range(n_head):             # static tiny loop; copies only, no MXU work
        ctx_scratch[:, hh * d_v:(hh + 1) * d_v] = ctx[hh]

    out = jnp.dot(ctx_scratch[...].astype(bf16), wf_ref[...],
                  preferred_element_type=f32)                              # (tq, d_model)
    o_ref[0] = (out + bf_ref[...]).astype(o_ref.dtype)


# ----------------------------------------------------------------------------
# Full module forward: a single pallas_call.
# ----------------------------------------------------------------------------
def scaled_dot_product_attention_bias_note(q, k, v, mask, params, n_head, d_k, d_v,
                                           temperature, *, return_attn=True,
                                           q_tile=None):
    """q, k, v: (b, n, d_model); mask: (b, n, n) bool (True == masked out)."""
    wq_t, wk_t, wv_t, wf_t, bf = params          # weights pre-transposed to (in, out)
    b, n, d_model = q.shape

    # Host-side (one-time) weight prep:
    #  * fold 1/temperature into the Q projection (exact: w_qs has bias=False),
    #  * head-major (h, d_model, d_k/d_v) layout for the batched projections,
    #  * bf16 so the MXU runs at its native rate and weight DMA/VMEM is halved.
    wq_h = (jnp.asarray(wq_t, jnp.float32) / float(temperature)
            ).reshape(d_model, n_head, d_k).transpose(1, 0, 2).astype(jnp.bfloat16)
    wk_h = jnp.asarray(wk_t, jnp.float32
            ).reshape(d_model, n_head, d_k).transpose(1, 0, 2).astype(jnp.bfloat16)
    wv_h = jnp.asarray(wv_t, jnp.float32
            ).reshape(d_model, n_head, d_v).transpose(1, 0, 2).astype(jnp.bfloat16)
    wf_b = jnp.asarray(wf_t, jnp.bfloat16)                      # (h*d_v, d_model)
    bf_f = jnp.asarray(bf, jnp.float32).reshape(1, d_model)

    q_b = q.astype(jnp.bfloat16)
    k_b = k.astype(jnp.bfloat16)
    v_b = v.astype(jnp.bfloat16)
    mask_i8 = mask.astype(jnp.int8)      # small DMA; compared against 0 in-kernel

    if q_tile is None:
        q_tile = 256 if n % 256 == 0 else n
    assert n % q_tile == 0, "query tile must divide sequence length"
    n_q_tiles = n // q_tile

    kern = functools.partial(_fused_mha_kernel, n_head=n_head, d_v=d_v,
                             return_attn=return_attn)

    if return_attn:
        out_shape = (jax.ShapeDtypeStruct((b, n, d_model), q.dtype),
                     jax.ShapeDtypeStruct((b, n_head, n, n), jnp.float32))
        out_specs = (pl.BlockSpec((1, q_tile, d_model), lambda bi, qi: (bi, qi, 0)),
                     pl.BlockSpec((1, n_head, q_tile, n), lambda bi, qi: (bi, 0, qi, 0)))
    else:
        out_shape = jax.ShapeDtypeStruct((b, n, d_model), q.dtype)
        out_specs = pl.BlockSpec((1, q_tile, d_model), lambda bi, qi: (bi, qi, 0))

    results = pl.pallas_call(
        kern,
        out_shape=out_shape,
        grid=(b, n_q_tiles),
        in_specs=[
            pl.BlockSpec((1, q_tile, d_model), lambda bi, qi: (bi, qi, 0)),   # q
            pl.BlockSpec((1, n, d_model), lambda bi, qi: (bi, 0, 0)),         # k
            pl.BlockSpec((1, n, d_model), lambda bi, qi: (bi, 0, 0)),         # v
            pl.BlockSpec((1, q_tile, n), lambda bi, qi: (bi, qi, 0)),         # mask (i8)
            pl.BlockSpec((n_head, d_model, d_k), lambda bi, qi: (0, 0, 0)),   # Wq (scaled)
            pl.BlockSpec((n_head, d_model, d_k), lambda bi, qi: (0, 0, 0)),   # Wk
            pl.BlockSpec((n_head, d_model, d_v), lambda bi, qi: (0, 0, 0)),   # Wv
            pl.BlockSpec((n_head * d_v, d_model), lambda bi, qi: (0, 0)),     # Wf
            pl.BlockSpec((1, d_model), lambda bi, qi: (0, 0)),                # bias
        ],
        out_specs=out_specs,
        scratch_shapes=[pltpu.VMEM((q_tile, n_head * d_v), jnp.float32)],
        compiler_params=pltpu.CompilerParams(
            # Both axes are independent -> shard across v7x's two TensorCores and
            # give the pipeline enough steps even when batch is small/odd.
            dimension_semantics=("parallel", "parallel"),
            # Explicit, generation-safe cap (v7x: 64 MiB physical / 32 MiB scoped).
            vmem_limit_bytes=32 * 1024 * 1024),
    )(q_b, k_b, v_b, mask_i8, wq_h, wk_h, wv_h, wf_b, bf_f)

    # TODO(synk): nn.Dropout layers are identity in eval mode; not modeled.
    if return_attn:
        out, attn = results
        return out, attn
    return results, None


# ----------------------------------------------------------------------------
# Pure-JAX reference (f32) for validation.
# ----------------------------------------------------------------------------
def reference_forward(q, k, v, mask, params, n_head, d_k, d_v, temperature):
    wq_t, wk_t, wv_t, wf_t, bf = params
    b, n, d_model = q.shape
    qp = (q @ wq_t).reshape(b, n, n_head, d_k).transpose(0, 2, 1, 3)
    kp = (k @ wk_t).reshape(b, n, n_head, d_k).transpose(0, 2, 1, 3)
    vp = (v @ wv_t).reshape(b, n, n_head, d_v).transpose(0, 2, 1, 3)
    attn = jnp.einsum("bhnd,bhmd->bhnm", qp, kp) / temperature
    attn = jnp.where(mask[:, None, :, :], -10000.0, attn)
    attn = jax.nn.softmax(attn, axis=-1)
    ctx = jnp.einsum("bhnm,bhmd->bhnd", attn, vp)
    ctx = ctx.transpose(0, 2, 1, 3).reshape(b, n, n_head * d_v)
    out = ctx @ wf_t + bf
    return out, attn


if __name__ == "__main__":
    # Small shapes consistent with the module's forward.
    b, n, d_model = 2, 8, 32
    n_head, d_k, d_v = 4, 8, 8
    temperature = float(np.sqrt(d_k))

    key = jax.random.PRNGKey(0)
    kq, kk, kv, kwq, kwk, kwv, kwf, kbf, kmask = jax.random.split(key, 9)

    q = jax.random.normal(kq, (b, n, d_model), dtype=jnp.float32)
    k = jax.random.normal(kk, (b, n, d_model), dtype=jnp.float32)
    v = jax.random.normal(kv, (b, n, d_model), dtype=jnp.float32)

    # PyTorch Linear weight is (out, in); we store the transpose (in, out).
    scale = 0.05
    wq_t = scale * jax.random.normal(kwq, (d_model, n_head * d_k), dtype=jnp.float32)
    wk_t = scale * jax.random.normal(kwk, (d_model, n_head * d_k), dtype=jnp.float32)
    wv_t = scale * jax.random.normal(kwv, (d_model, n_head * d_v), dtype=jnp.float32)
    wf_t = scale * jax.random.normal(kwf, (n_head * d_v, d_model), dtype=jnp.float32)
    bf = scale * jax.random.normal(kbf, (1, d_model), dtype=jnp.float32)
    params = (wq_t, wk_t, wv_t, wf_t, bf)

    # Boolean mask (True => masked with -10000 before softmax), shape (b, n, n).
    mask = jax.random.bernoulli(kmask, 0.3, (b, n, n))

    out, attn = scaled_dot_product_attention_bias_note(
        q, k, v, mask, params, n_head, d_k, d_v, temperature)
    out = jax.block_until_ready(out)
    attn = jax.block_until_ready(attn)

    ref_out, ref_attn = reference_forward(
        q, k, v, mask, params, n_head, d_k, d_v, temperature)

    assert out.shape == (b, n, d_model)
    assert attn.shape == (b, n_head, n, n)
    np.testing.assert_allclose(np.asarray(out), np.asarray(ref_out),
                               atol=2e-2, rtol=2e-2)
    np.testing.assert_allclose(np.asarray(attn), np.asarray(ref_attn),
                               atol=2e-2, rtol=2e-2)

    # Also exercise the cheaper inference path that skips the (b, h, n, n)
    # attention-probability writeback entirely.
    out_only, _ = scaled_dot_product_attention_bias_note(
        q, k, v, mask, params, n_head, d_k, d_v, temperature, return_attn=False)
    out_only = jax.block_until_ready(out_only)
    np.testing.assert_allclose(np.asarray(out_only), np.asarray(ref_out),
                               atol=2e-2, rtol=2e-2)

    print("KERNEL_OK")
</pallas_src>

<mosaic_0001>
module attributes {stable_mosaic.version = 11 : i64} {
  func.func @_fused_mha_kernel(%arg0: i32, %arg1: i32, %arg2: memref<1x8x32xbf16, #tpu.memory_space<vmem>>, %arg3: memref<1x8x32xbf16, #tpu.memory_space<vmem>>, %arg4: memref<1x8x32xbf16, #tpu.memory_space<vmem>>, %arg5: memref<1x8x8xi8, #tpu.memory_space<vmem>>, %arg6: memref<4x32x8xbf16, #tpu.memory_space<vmem>>, %arg7: memref<4x32x8xbf16, #tpu.memory_space<vmem>>, %arg8: memref<4x32x8xbf16, #tpu.memory_space<vmem>>, %arg9: memref<32x32xbf16, #tpu.memory_space<vmem>>, %arg10: memref<1x32xf32, #tpu.memory_space<vmem>>, %arg11: memref<1x8x32xf32, #tpu.memory_space<vmem>>, %arg12: memref<1x4x8x8xf32, #tpu.memory_space<vmem>>, %arg13: memref<8x32xf32, #tpu.memory_space<vmem>>) attributes {dimension_semantics = [#tpu.dimension_semantics<parallel>, #tpu.dimension_semantics<parallel>], iteration_bounds = array<i64: 2, 1>, scalar_prefetch = 0 : i64, scratch_operands = 1 : i64, tpu.core_type = #tpu.core_type<tc>, window_params = [{transform_indices = @transform_0, window_bounds = array<i64: 1, 8, 32>}, {transform_indices = @transform_1, window_bounds = array<i64: 1, 8, 32>}, {transform_indices = @transform_2, window_bounds = array<i64: 1, 8, 32>}, {transform_indices = @transform_3, window_bounds = array<i64: 1, 8, 8>}, {pipeline_mode = #tpu.pipeline_mode<synchronous>, transform_indices = @transform_4, window_bounds = array<i64: 4, 32, 8>}, {pipeline_mode = #tpu.pipeline_mode<synchronous>, transform_indices = @transform_5, window_bounds = array<i64: 4, 32, 8>}, {pipeline_mode = #tpu.pipeline_mode<synchronous>, transform_indices = @transform_6, window_bounds = array<i64: 4, 32, 8>}, {pipeline_mode = #tpu.pipeline_mode<synchronous>, transform_indices = @transform_7, window_bounds = array<i64: 32, 32>}, {pipeline_mode = #tpu.pipeline_mode<synchronous>, transform_indices = @transform_8, window_bounds = array<i64: 1, 32>}, {transform_indices = @transform_9, window_bounds = array<i64: 1, 8, 32>}, {transform_indices = @transform_10, window_bounds = array<i64: 1, 4, 8, 8>}]} {
    %c0 = arith.constant 0 : index
    %c0_0 = arith.constant 0 : index
    %c0_1 = arith.constant 0 : index
    %0 = vector.load %arg2[%c0, %c0_0, %c0_1] : memref<1x8x32xbf16, #tpu.memory_space<vmem>>, vector<1x8x32xbf16>
    %1 = vector.shape_cast %0 : vector<1x8x32xbf16> to vector<8x32xbf16>
    %c0_2 = arith.constant 0 : index
    %c0_3 = arith.constant 0 : index
    %c0_4 = arith.constant 0 : index
    %2 = vector.load %arg3[%c0_2, %c0_3, %c0_4] : memref<1x8x32xbf16, #tpu.memory_space<vmem>>, vector<1x8x32xbf16>
    %3 = vector.shape_cast %2 : vector<1x8x32xbf16> to vector<8x32xbf16>
    %c0_5 = arith.constant 0 : index
    %c0_6 = arith.constant 0 : index
    %c0_7 = arith.constant 0 : index
    %4 = vector.load %arg4[%c0_5, %c0_6, %c0_7] : memref<1x8x32xbf16, #tpu.memory_space<vmem>>, vector<1x8x32xbf16>
    %5 = vector.shape_cast %4 : vector<1x8x32xbf16> to vector<8x32xbf16>
    %c0_8 = arith.constant 0 : index
    %c0_9 = arith.constant 0 : index
    %c0_10 = arith.constant 0 : index
    %6 = vector.load %arg5[%c0_8, %c0_9, %c0_10] : memref<1x8x8xi8, #tpu.memory_space<vmem>>, vector<1x8x8xi8>
    %7 = vector.shape_cast %6 : vector<1x8x8xi8> to vector<8x8xi8>
    %c0_i8 = arith.constant 0 : i8
    %8 = vector.broadcast %c0_i8 : i8 to vector<8x8xi8>
    %9 = arith.cmpi ne, %7, %8 : vector<8x8xi8>
    %10 = vector.shape_cast %1 : vector<8x32xbf16> to vector<1x8x32xbf16>
    %11 = vector.shape_cast %10 : vector<1x8x32xbf16> to vector<1x8x32xbf16>
    %12 = vector.broadcast %11 : vector<1x8x32xbf16> to vector<4x8x32xbf16>
    %c0_11 = arith.constant 0 : index
    %c0_12 = arith.constant 0 : index
    %c0_13 = arith.constant 0 : index
    %13 = vector.load %arg6[%c0_11, %c0_12, %c0_13] : memref<4x32x8xbf16, #tpu.memory_space<vmem>>, vector<4x32x8xbf16>
    %cst = arith.constant dense<0.000000e+00> : vector<4x8x8xf32>
    %14 = tpu.matmul %12, %13, %cst {dimension_numbers = #tpu.dot_dimension_numbers<[2], [1], [1], [2], [0, 0, 0, 1, 1, 2], [0], [0]>} : vector<4x8x32xbf16>, vector<4x32x8xbf16>, vector<4x8x8xf32> -> vector<4x8x8xf32>
    %15 = arith.truncf %14 : vector<4x8x8xf32> to vector<4x8x8xbf16>
    %16 = vector.shape_cast %3 : vector<8x32xbf16> to vector<1x8x32xbf16>
    %17 = vector.shape_cast %16 : vector<1x8x32xbf16> to vector<1x8x32xbf16>
    %18 = vector.broadcast %17 : vector<1x8x32xbf16> to vector<4x8x32xbf16>
    %c0_14 = arith.constant 0 : index
    %c0_15 = arith.constant 0 : index
    %c0_16 = arith.constant 0 : index
    %19 = vector.load %arg7[%c0_14, %c0_15, %c0_16] : memref<4x32x8xbf16, #tpu.memory_space<vmem>>, vector<4x32x8xbf16>
    %cst_17 = arith.constant dense<0.000000e+00> : vector<4x8x8xf32>
    %20 = tpu.matmul %18, %19, %cst_17 {dimension_numbers = #tpu.dot_dimension_numbers<[2], [1], [1], [2], [0, 0, 0, 1, 1, 2], [0], [0]>} : vector<4x8x32xbf16>, vector<4x32x8xbf16>, vector<4x8x8xf32> -> vector<4x8x8xf32>
    %21 = arith.truncf %20 : vector<4x8x8xf32> to vector<4x8x8xbf16>
    %22 = vector.shape_cast %5 : vector<8x32xbf16> to vector<1x8x32xbf16>
    %23 = vector.shape_cast %22 : vector<1x8x32xbf16> to vector<1x8x32xbf16>
    %24 = vector.broadcast %23 : vector<1x8x32xbf16> to vector<4x8x32xbf16>
    %c0_18 = arith.constant 0 : index
    %c0_19 = arith.constant 0 : index
    %c0_20 = arith.constant 0 : index
    %25 = vector.load %arg8[%c0_18, %c0_19, %c0_20] : memref<4x32x8xbf16, #tpu.memory_space<vmem>>, vector<4x32x8xbf16>
    %cst_21 = arith.constant dense<0.000000e+00> : vector<4x8x8xf32>
    %26 = tpu.matmul %24, %25, %cst_21 {dimension_numbers = #tpu.dot_dimension_numbers<[2], [1], [1], [2], [0, 0, 0, 1, 1, 2], [0], [0]>} : vector<4x8x32xbf16>, vector<4x32x8xbf16>, vector<4x8x8xf32> -> vector<4x8x8xf32>
    %27 = arith.truncf %26 : vector<4x8x8xf32> to vector<4x8x8xbf16>
    %cst_22 = arith.constant dense<0.000000e+00> : vector<4x8x8xf32>
    %28 = tpu.matmul %15, %21, %cst_22 {dimension_numbers = #tpu.dot_dimension_numbers<[2], [2], [1], [1], [0, 0, 0, 1, 1, 1], [0], [0]>} : vector<4x8x8xbf16>, vector<4x8x8xbf16>, vector<4x8x8xf32> -> vector<4x8x8xf32>
    %29 = vector.shape_cast %9 : vector<8x8xi1> to vector<1x8x8xi1>
    %cst_23 = arith.constant -1.000000e+04 : f32
    %30 = vector.shape_cast %29 : vector<1x8x8xi1> to vector<1x8x8xi1>
    %31 = vector.broadcast %30 : vector<1x8x8xi1> to vector<4x8x8xi1>
    %32 = vector.broadcast %cst_23 : f32 to vector<4x8x8xf32>
    %33 = arith.select %31, %32, %28 : vector<4x8x8xi1>, vector<4x8x8xf32>
    %cst_24 = arith.constant dense<0xFF800000> : vector<4x8xf32>
    %34 = vector.multi_reduction <maximumf>, %33, %cst_24 [2] : vector<4x8x8xf32> to vector<4x8xf32>
    %35 = vector.shape_cast %34 : vector<4x8xf32> to vector<4x8x1xf32>
    %36 = vector.broadcast %35 : vector<4x8x1xf32> to vector<4x8x8xf32>
    %37 = arith.subf %33, %36 : vector<4x8x8xf32>
    %38 = math.exp %37 : vector<4x8x8xf32>
    %cst_25 = arith.constant dense<0.000000e+00> : vector<4x8xf32>
    %39 = vector.multi_reduction <add>, %38, %cst_25 [2] : vector<4x8x8xf32> to vector<4x8xf32>
    %40 = vector.shape_cast %39 : vector<4x8xf32> to vector<4x8x1xf32>
    %41 = tpu.reciprocal %40 {approx = true} : vector<4x8x1xf32> -> vector<4x8x1xf32>
    %42 = vector.broadcast %41 : vector<4x8x1xf32> to vector<4x8x8xf32>
    %43 = arith.mulf %38, %42 : vector<4x8x8xf32>
    %c0_26 = arith.constant 0 : index
    %c0_27 = arith.constant 0 : index
    %c0_28 = arith.constant 0 : index
    %c0_29 = arith.constant 0 : index
    %44 = vector.load %arg12[%c0_26, %c0_27, %c0_28, %c0_29] : memref<1x4x8x8xf32, #tpu.memory_space<vmem>>, vector<1x4x8x8xf32>
    %45 = vector.shape_cast %44 : vector<1x4x8x8xf32> to vector<4x8x8xf32>
    %46 = vector.shape_cast %43 : vector<4x8x8xf32> to vector<1x4x8x8xf32>
    tpu.vector_store %arg12[%c0_26, %c0_27, %c0_28, %c0_29], %46 {strides = array<i32>} : memref<1x4x8x8xf32, #tpu.memory_space<vmem>>, vector<1x4x8x8xf32>,
    %47 = arith.truncf %43 : vector<4x8x8xf32> to vector<4x8x8xbf16>
    %cst_30 = arith.constant dense<0.000000e+00> : vector<4x8x8xf32>
    %48 = tpu.matmul %47, %27, %cst_30 {dimension_numbers = #tpu.dot_dimension_numbers<[2], [1], [1], [2], [0, 0, 0, 1, 1, 2], [0], [0]>} : vector<4x8x8xbf16>, vector<4x8x8xbf16>, vector<4x8x8xf32> -> vector<4x8x8xf32>
    %49 = vector.extract_strided_slice %48 {offsets = [0, 0, 0], sizes = [1, 8, 8], strides = [1, 1, 1]} : vector<4x8x8xf32> to vector<1x8x8xf32>
    %50 = vector.shape_cast %49 : vector<1x8x8xf32> to vector<8x8xf32>
    %c0_31 = arith.constant 0 : index
    %c0_32 = arith.constant 0 : index
    %51 = vector.load %arg13[%c0_31, %c0_32] : memref<8x32xf32, #tpu.memory_space<vmem>>, vector<8x8xf32>
    tpu.vector_store %arg13[%c0_31, %c0_32], %50 {strides = array<i32>} : memref<8x32xf32, #tpu.memory_space<vmem>>, vector<8x8xf32>,
    %52 = vector.extract_strided_slice %48 {offsets = [1, 0, 0], sizes = [1, 8, 8], strides = [1, 1, 1]} : vector<4x8x8xf32> to vector<1x8x8xf32>
    %53 = vector.shape_cast %52 : vector<1x8x8xf32> to vector<8x8xf32>
    %c0_33 = arith.constant 0 : index
    %c8 = arith.constant 8 : index
    %54 = vector.load %arg13[%c0_33, %c8] : memref<8x32xf32, #tpu.memory_space<vmem>>, vector<8x8xf32>
    tpu.vector_store %arg13[%c0_33, %c8], %53 {strides = array<i32>} : memref<8x32xf32, #tpu.memory_space<vmem>>, vector<8x8xf32>,
    %55 = vector.extract_strided_slice %48 {offsets = [2, 0, 0], sizes = [1, 8, 8], strides = [1, 1, 1]} : vector<4x8x8xf32> to vector<1x8x8xf32>
    %56 = vector.shape_cast %55 : vector<1x8x8xf32> to vector<8x8xf32>
    %c0_34 = arith.constant 0 : index
    %c16 = arith.constant 16 : index
    %57 = vector.load %arg13[%c0_34, %c16] : memref<8x32xf32, #tpu.memory_space<vmem>>, vector<8x8xf32>
    tpu.vector_store %arg13[%c0_34, %c16], %56 {strides = array<i32>} : memref<8x32xf32, #tpu.memory_space<vmem>>, vector<8x8xf32>,
    %58 = vector.extract_strided_slice %48 {offsets = [3, 0, 0], sizes = [1, 8, 8], strides = [1, 1, 1]} : vector<4x8x8xf32> to vector<1x8x8xf32>
    %59 = vector.shape_cast %58 : vector<1x8x8xf32> to vector<8x8xf32>
    %c0_35 = arith.constant 0 : index
    %c24 = arith.constant 24 : index
    %60 = vector.load %arg13[%c0_35, %c24] : memref<8x32xf32, #tpu.memory_space<vmem>>, vector<8x8xf32>
    tpu.vector_store %arg13[%c0_35, %c24], %59 {strides = array<i32>} : memref<8x32xf32, #tpu.memory_space<vmem>>, vector<8x8xf32>,
    %c0_36 = arith.constant 0 : index
    %c0_37 = arith.constant 0 : index
    %61 = vector.load %arg13[%c0_36, %c0_37] : memref<8x32xf32, #tpu.memory_space<vmem>>, vector<8x32xf32>
    %62 = arith.truncf %61 : vector<8x32xf32> to vector<8x32xbf16>
    %c0_38 = arith.constant 0 : index
    %c0_39 = arith.constant 0 : index
    %63 = vector.load %arg9[%c0_38, %c0_39] : memref<32x32xbf16, #tpu.memory_space<vmem>>, vector<32x32xbf16>
    %cst_40 = arith.constant dense<0.000000e+00> : vector<8x32xf32>
    %64 = tpu.matmul %62, %63, %cst_40 {dimension_numbers = #tpu.dot_dimension_numbers<[1], [0], [0], [1], [0, 0, 1, 1], [], []>} : vector<8x32xbf16>, vector<32x32xbf16>, vector<8x32xf32> -> vector<8x32xf32>
    %c0_41 = arith.constant 0 : index
    %c0_42 = arith.constant 0 : index
    %65 = vector.load %arg10[%c0_41, %c0_42] : memref<1x32xf32, #tpu.memory_space<vmem>>, vector<1x32xf32>
    %66 = vector.broadcast %65 : vector<1x32xf32> to vector<8x32xf32>
    %67 = arith.addf %64, %66 : vector<8x32xf32>
    %c0_43 = arith.constant 0 : index
    %c0_44 = arith.constant 0 : index
    %c0_45 = arith.constant 0 : index
    %68 = vector.load %arg11[%c0_43, %c0_44, %c0_45] : memref<1x8x32xf32, #tpu.memory_space<vmem>>, vector<1x8x32xf32>
    %69 = vector.shape_cast %68 : vector<1x8x32xf32> to vector<8x32xf32>
    %70 = vector.shape_cast %67 : vector<8x32xf32> to vector<1x8x32xf32>
    tpu.vector_store %arg11[%c0_43, %c0_44, %c0_45], %70 {strides = array<i32>} : memref<1x8x32xf32, #tpu.memory_space<vmem>>, vector<1x8x32xf32>,
    return
  }
  func.func @transform_0(%arg0: i32, %arg1: i32) -> (i32, i32, i32) {
    %c0_i32 = arith.constant 0 : i32
    %c0_i32_0 = arith.constant 0 : i32
    return %arg0, %arg1, %c0_i32 : i32, i32, i32
  }
  func.func @transform_1(%arg0: i32, %arg1: i32) -> (i32, i32, i32) {
    %c0_i32 = arith.constant 0 : i32
    %c0_i32_0 = arith.constant 0 : i32
    %c0_i32_1 = arith.constant 0 : i32
    return %arg0, %c0_i32, %c0_i32_0 : i32, i32, i32
  }
  func.func @transform_2(%arg0: i32, %arg1: i32) -> (i32, i32, i32) {
    %c0_i32 = arith.constant 0 : i32
    %c0_i32_0 = arith.constant 0 : i32
    %c0_i32_1 = arith.constant 0 : i32
    return %arg0, %c0_i32, %c0_i32_0 : i32, i32, i32
  }
  func.func @transform_3(%arg0: i32, %arg1: i32) -> (i32, i32, i32) {
    %c0_i32 = arith.constant 0 : i32
    %c0_i32_0 = arith.constant 0 : i32
    return %arg0, %arg1, %c0_i32 : i32, i32, i32
  }
  func.func @transform_4(%arg0: i32, %arg1: i32) -> (i32, i32, i32) {
    %c0_i32 = arith.constant 0 : i32
    %c0_i32_0 = arith.constant 0 : i32
    %c0_i32_1 = arith.constant 0 : i32
    %c0_i32_2 = arith.constant 0 : i32
    return %c0_i32, %c0_i32_0, %c0_i32_1 : i32, i32, i32
  }
  func.func @transform_5(%arg0: i32, %arg1: i32) -> (i32, i32, i32) {
    %c0_i32 = arith.constant 0 : i32
    %c0_i32_0 = arith.constant 0 : i32
    %c0_i32_1 = arith.constant 0 : i32
    %c0_i32_2 = arith.constant 0 : i32
    return %c0_i32, %c0_i32_0, %c0_i32_1 : i32, i32, i32
  }
  func.func @transform_6(%arg0: i32, %arg1: i32) -> (i32, i32, i32) {
    %c0_i32 = arith.constant 0 : i32
    %c0_i32_0 = arith.constant 0 : i32
    %c0_i32_1 = arith.constant 0 : i32
    %c0_i32_2 = arith.constant 0 : i32
    return %c0_i32, %c0_i32_0, %c0_i32_1 : i32, i32, i32
  }
  func.func @transform_7(%arg0: i32, %arg1: i32) -> (i32, i32) {
    %c0_i32 = arith.constant 0 : i32
    %c0_i32_0 = arith.constant 0 : i32
    %c0_i32_1 = arith.constant 0 : i32
    return %c0_i32, %c0_i32_0 : i32, i32
  }
  func.func @transform_8(%arg0: i32, %arg1: i32) -> (i32, i32) {
    %c0_i32 = arith.constant 0 : i32
    %c0_i32_0 = arith.constant 0 : i32
    %c0_i32_1 = arith.constant 0 : i32
    return %c0_i32, %c0_i32_0 : i32, i32
  }
  func.func @transform_9(%arg0: i32, %arg1: i32) -> (i32, i32, i32) {
    %c0_i32 = arith.constant 0 : i32
    %c0_i32_0 = arith.constant 0 : i32
    return %arg0, %arg1, %c0_i32 : i32, i32, i32
  }
  func.func @transform_10(%arg0: i32, %arg1: i32) -> (i32, i32, i32, i32) {
    %c0_i32 = arith.constant 0 : i32
    %c0_i32_0 = arith.constant 0 : i32
    %c0_i32_1 = arith.constant 0 : i32
    return %arg0, %c0_i32, %arg1, %c0_i32_0 : i32, i32, i32, i32
  }
}

</mosaic_0001>

<bundles_post_ra>
// kernel: tpu_custom_call.1
= control target key start
LH: loop header
LB: loop body
LE: loop exit
PB: predicated region body
PF: predicated region fallthrough
CT: control target
= control target key end

     0   :  { %s2810_s0 = inlined_call_operand.vmem [shape: bf16[2,8,32], index: 0, kind: input, shape index: {}]   ;;  %s2811_s1 = inlined_call_operand.vmem [shape: bf16[2,8,32], index: 1, kind: input, shape index: {}]   ;;  %s2812_s2 = inlined_call_operand.vmem [shape: bf16[2,8,32], index: 2, kind: input, shape index: {}]   ;;  %s2813_s3 = inlined_call_operand.vmem [shape: s8[2,8,8], index: 3, kind: input, shape index: {}]   ;;  %s2814_s4 = inlined_call_operand.vmem [shape: bf16[4,32,8], index: 4, kind: input, shape index: {}]   ;;  %s2815_s5 = inlined_call_operand.vmem [shape: bf16[4,32,8], index: 5, kind: input, shape index: {}]   ;;  %s2816_s6 = inlined_call_operand.vmem [shape: bf16[4,32,8], index: 6, kind: input, shape index: {}]   ;;  %s2817_s7 = inlined_call_operand.vmem [shape: bf16[32,32], index: 7, kind: input, shape index: {}]   ;;  %s2818_s8 = inlined_call_operand.vmem [shape: f32[1,32], index: 8, kind: input, shape index: {}]   ;;  %s2819_s9 = inlined_call_operand.hbm [shape: f32[2,8,32], index: 9, kind: output, shape index: {0}]   ;;  %s2820_s10 = inlined_call_operand.hbm [shape: f32[2,4,8,8], index: 10, kind: output, shape index: {1}]  }
   0x1   :  { %2821 = sst [smem:[#allocation9_spill]] %s2810_s0 }
   0x2   :  { %2822 = sst [smem:[#allocation10_spill]] %s2811_s1 }
   0x3   :  { %2823 = sst [smem:[#allocation11_spill]] %s2812_s2 }
   0x4   :  { %2824 = sst [smem:[#allocation12_spill]] %s2813_s3 }
   0x5   :  { %2825 = sst [smem:[#allocation13_spill]] %s2814_s4 }
   0x6   :  { %16 = vsyncpa [#allocation4], 0 }
   0x7   :  { %18 = vsyncpa [#allocation4 + $0x1], 0 }
   0x8   :  { %19 = vsyncpa [#allocation6], 0 }
   0x9   :  { %21 = vsyncpa [#allocation6 + $0x1], 0  ;;  %s2416_s13 = smov 0   ;;  %s2418_s14 = smov 0  }
   0xa   :  { %s2420_s15 = smov 0   ;;  %s2422_s16 = smov 0  }
   0xb   :  { %s2424_s17 = smov 0   ;;  %s2426_s18 = smov 0  }
   0xc LB: > { %s1857_s19 = sadd.s32 4294967295, %s2350_s18   ;;  %s1858_s20 = sadd.s32 4294967294, %s2350_s18   ;;  %s2350_s18 = sphi %s2426_s18, %s27_s18   ;;  %s2346_s17 = sphi %s2424_s17, %s2840_s17   ;;  %s2342_s16 = sphi %s2422_s16, %s2839_s16   ;;  %s2338_s15 = sphi %s2420_s15, %s2838_s15   ;;  %s2334_s14 = sphi %s2418_s14, %s2837_s14   ;;  %s2330_s13 = sphi %s2416_s13, %s2836_s13  }
   0xd   : > { %s39_s21 = sadd.s32 1, %s2346_s17  ;;  %s261_s22 = sadd.s32 1, %s2338_s15 }
   0xe   : > { %p41_p0 = scmp.ge.s32.totalorder %s39_s21, 2  ;;  %p271_p1 = scmp.ne.s32.totalorder %s2338_s15, %s2334_s14 }
   0xf   : > { %p272_p2 = scmp.eq.s32.totalorder %s1857_s19, 1  ;;  %p277_p3 = scmp.ne.s32.totalorder %s2334_s14, %s2330_s13 }
  0x10   : > { %s2842_s21 = smov (%p41_p0, %s39_s21), 0  ;;  %p278_p5 = scmp.eq.s32.totalorder %s1858_s20, 1 }
  0x11   : > { %p2456_p4 = por %p272_p2, %p271_p1  ;;  %s256_s24 = ssub.s32 %s2346_s17, %s2842_s21 }
  0x12   : > { %p1861_p6 = scmp.ge.s32.totalorder %s2350_s18, 1  ;;  %p259_p7 = scmp.eq.s32.totalorder %s256_s24, 0 }
  0x13   : > { %p2463_p8 = por %p278_p5, %p277_p3  ;;  %p373_p9 = scmp.lt.s32.totalorder %s2350_s18, 3 }
  0x14   : > { %s2469_s26 = scalar_select %p259_p7, %s2338_s15, %s261_s22  }
  0x15   : > { %p374_p10 = pnand %p1861_p6, %p373_p9 }
  0x16   : > { %s2828_s4 = sld [smem:[#allocation13_spill]] (!%p374_p10)  ;;  %v2352_v1 = vmov (!%p374_p10), 0.0   ;;  %vm2353_vm0 = vmmov (!%p374_p10), 0   ;;  %p433_p11 = scmp.lt.s32.totalorder (!%p374_p10), %s2342_s16, 1  ;;  %vm491_vm1 = vcmask (!%p374_p10), 261120   ;;  %v2206_v10 = vld [vmem:[%s2815_s5] sm:$0xff] (!%p374_p10)  }
  0x17   : > { %377 = sbr.rel (%p374_p10) target bundleno = 1380 (0x564), region = 56  ;;  %1979 = vmatprep.subr.bf16.mxu0 (!%p374_p10), %v2352_v1  ;;  %1987 = vmatprep.subr.bf16.mxu1 (!%p374_p10), %v2352_v1  ;;  %s2829_s0 = sld [smem:[#allocation9_spill]] (!%p374_p10)  ;;  %v2207_v11 = vld [vmem:[%s2815_s5 + $0x10] sm:$0xff] (!%p374_p10)   ;;  %v2208_v12 = vld [vmem:[%s2815_s5 + $0x8] sm:$0xff] (!%p374_p10)   ;;  %v2209_v13 = vld [vmem:[%s2815_s5 + $0x18] sm:$0xff] (!%p374_p10)   ;;  %vm1157_vm2 = vcmask (!%p374_p10), 64512  }
  0x18   : > { %1983 = vmatprep.mubr.msk.bf16.mxu0 (!%p374_p10), %vm2353_vm0, %v2352_v1  ;;  %1991 = vmatprep.mubr.msk.bf16.mxu1 (!%p374_p10), %vm2353_vm0, %v2352_v1  ;;  %s2830_s1 = sld [smem:[#allocation10_spill]] (!%p374_p10)  ;;  %v2210_v15 = vld [vmem:[%s2815_s5 + $0x20] sm:$0xff] (!%p374_p10)   ;;  %v2211_v16 = vld [vmem:[%s2815_s5 + $0x30] sm:$0xff] (!%p374_p10)   ;;  %v2212_v17 = vld [vmem:[%s2815_s5 + $0x28] sm:$0xff] (!%p374_p10)   ;;  %s2831_s2 = sld [smem:[#allocation11_spill]] (!%p374_p10)  ;;  %vm1406_vm3 = vcmask (!%p374_p10), 1043456  }
  0x19   : > { %v2213_v18 = vld [vmem:[%s2815_s5 + $0x38] sm:$0xff] (!%p374_p10)   ;;  %v2214_v19 = vld [vmem:[%s2816_s6] sm:$0xff] (!%p374_p10)   ;;  %v2215_v20 = vld [vmem:[%s2816_s6 + $0x10] sm:$0xff] (!%p374_p10)   ;;  %s2832_s3 = sld [smem:[#allocation12_spill]] (!%p374_p10)  ;;  %s2355_s28 = smov (!%p374_p10), 8   ;;  %vm1593_vm6 = vcmask (!%p374_p10), 130112  }
  0x1a   : > { %v2216_v21 = vld [vmem:[%s2816_s6 + $0x8] sm:$0xff] (!%p374_p10)   ;;  %v2217_v22 = vld [vmem:[%s2816_s6 + $0x18] sm:$0xff] (!%p374_p10)   ;;  %v2218_v24 = vld [vmem:[%s2816_s6 + $0x20] sm:$0xff] (!%p374_p10)   ;;  %vm1599_vm7 = vcmask (!%p374_p10), 195712   ;;  %vm1605_vm8 = vcmask (!%p374_p10), 261312  }
  0x1b   : > { %v2219_v25 = vld [vmem:[%s2816_s6 + $0x30] sm:$0xff] (!%p374_p10)   ;;  %v2220_v26 = vld [vmem:[%s2816_s6 + $0x28] sm:$0xff] (!%p374_p10)   ;;  %v2221_v27 = vld [vmem:[%s2816_s6 + $0x38] sm:$0xff] (!%p374_p10)  }
  0x1c   : > { %v2198_v0 = vld [vmem:[%s2828_s4] sm:$0xff] (!%p374_p10)   ;;  %v2199_v2 = vld [vmem:[%s2828_s4 + $0x10] sm:$0xff] (!%p374_p10)   ;;  %v2200_v3 = vld [vmem:[%s2828_s4 + $0x8] sm:$0xff] (!%p374_p10)  }
  0x1d   : > { %1980 = vmatpush3.bf16.msra.mxu0 (!%p374_p10), %v2198_v0  ;;  %1988 = vmatpush3.bf16.msra.mxu1 (!%p374_p10), %v2199_v2  ;;  %v2201_v4 = vld [vmem:[%s2828_s4 + $0x18] sm:$0xff] (!%p374_p10)   ;;  %v2202_v5 = vld [vmem:[%s2828_s4 + $0x20] sm:$0xff] (!%p374_p10)   ;;  %v2203_v6 = vld [vmem:[%s2828_s4 + $0x30] sm:$0xff] (!%p374_p10)  }
  0x1e   : > { %1981 = vmatprep.subr.bf16.mxu0 %v2352_v1  ;;  %1989 = vmatprep.subr.bf16.mxu1 %v2352_v1  ;;  %s2493_s22 = scalar_select %p433_p11, %s2342_s16, 1  ;;  %v2204_v8 = vld [vmem:[%s2828_s4 + $0x28] sm:$0xff]   ;;  %v2205_v9 = vld [vmem:[%s2828_s4 + $0x38] sm:$0xff]  }
  0x20   : > { %s2496_s24 = sshll.u32 %s2493_s22, 2  ;;  %s1867_s29 = sshll.u32 %s2493_s22, 1 }
  0x21   : > { %1982 = vmatpush3.bf16.msra.mxu0 %v2200_v3  ;;  %1990 = vmatpush3.bf16.msra.mxu1 %v2201_v4  ;;  %s439_s11 = scalar_lea.vmem %s2829_s0, %s2496_s24  ;;  %s443_s30 = scalar_lea.vmem %s2830_s1, %s2496_s24 }
  0x22   : > { %1995 = vmatprep.subr.bf16.mxu0 %v2352_v1  ;;  %v458_v7 = vld [vmem:[%s439_s11] sm:$0xf]  ;;  %2003 = vmatprep.subr.bf16.mxu1 %v2352_v1  ;;  %s447_s12 = scalar_lea.vmem %s2831_s2, %s2496_s24  ;;  %s2683_s22 = sand.u32 1, %s2334_s14  }
  0x23   : > { %v459_v14 = vld [vmem:[%s443_s30] sm:$0xf]  ;;  %s1863_s19 = sshll.u32 %s2683_s22, 5  ;;  %s2357_s30 = smov 24  }
  0x24   : > { %1984 = vmatmul.mubr.msk.bf16.vlgmr.msra.gmra.mrb[0].mxu0 %vm491_vm1, %v458_v7  ;;  %1992 = vmatmul.mubr.msk.bf16.vlgmr.msra.gmra.mrb[0].mxu1 %vm491_vm1, %v458_v7  ;;  %v460_v23 = vld [vmem:[%s447_s12] sm:$0xf]  ;;  %s454_s12 = scalar_lea.vmem %s2832_s3, %s1867_s29  ;;  %s2686_s20 = scalar_lea.vmem [#allocation5], %s1863_s19 }
  0x25   : > { %1996 = vmatpush3.bf16.msra.mxu0 %v2202_v5  ;;  %2004 = vmatpush3.bf16.msra.mxu1 %v2203_v6  ;;  %s2356_s29 = smov 16   ;;  %s1710_s11 = sshll.u32 %s2686_s20, 4  ;;  %s2721_s11 = int_to_ptr.vmem [resolvable:$true] %s1710_s11 }
  0x26   : > { %1997 = vmatprep.subr.bf16.mxu0 %v2352_v1  ;;  %2005 = vmatprep.subr.bf16.mxu1 %v2352_v1  ;;  %s2240_s0 = scalar_lea.vmem %s2721_s11, 512 }
  0x27   : > { %1999 = vmatprep.mubr.msk.bf16.mxu0 %vm2353_vm0, %v2352_v1  ;;  %2007 = vmatprep.mubr.msk.bf16.mxu1 %vm2353_vm0, %v2352_v1  ;;  %p2241_p12 = scmp.ne.s32.totalorder %s2721_s11, %s2240_s0 }
  0x29   : > { %1998 = vmatpush3.bf16.msra.mxu0 %v2204_v8  ;;  %2006 = vmatpush3.bf16.msra.mxu1 %v2205_v9  ;;  %p2242_p13 = pnand %p2241_p12, %p2456_p4 }
  0x2a   : > { %2011 = vmatprep.subr.bf16.mxu0 %v2352_v1  ;;  %2019 = vmatprep.subr.bf16.mxu1 %v2352_v1 }
  0x2b   : > { %p2243_p0 = pneg %p2242_p13 }
  0x2c   : > { %2000 = vmatmul.mubr.msk.bf16.vlgmr.msra.gmra.mrb[4].mxu0 %vm491_vm1, %v458_v7  ;;  %2008 = vmatmul.mubr.msk.bf16.vlgmr.msra.gmra.mrb[4].mxu1 %vm491_vm1, %v458_v7 }
  0x2d   : > { %2012 = vmatpush3.bf16.msra.mxu0 %v2206_v10  ;;  %2020 = vmatpush3.bf16.msra.mxu1 %v2207_v11 }
  0x2e   : > { %2013 = vmatprep.subr.bf16.mxu0 %v2352_v1  ;;  %2021 = vmatprep.subr.bf16.mxu1 %v2352_v1 }
  0x2f   : > { %2015 = vmatprep.mubr.msk.bf16.mxu0 %vm2353_vm0, %v2352_v1  ;;  %2023 = vmatprep.mubr.msk.bf16.mxu1 %vm2353_vm0, %v2352_v1 }
  0x31   : > { %2014 = vmatpush3.bf16.msra.mxu0 %v2208_v12  ;;  %2022 = vmatpush3.bf16.msra.mxu1 %v2209_v13 }
  0x32   : > { %2027 = vmatprep.subr.bf16.mxu0 %v2352_v1  ;;  %2035 = vmatprep.subr.bf16.mxu1 %v2352_v1 }
  0x34   : > { %2016 = vmatmul.mubr.msk.bf16.vlgmr.msra.gmra.mrb[8].mxu0 %vm491_vm1, %v459_v14  ;;  %2024 = vmatmul.mubr.msk.bf16.vlgmr.msra.gmra.mrb[8].mxu1 %vm491_vm1, %v459_v14 }
  0x35   : > { %2028 = vmatpush3.bf16.msra.mxu0 %v2210_v15  ;;  %2036 = vmatpush3.bf16.msra.mxu1 %v2211_v16 }
  0x36   : > { %2029 = vmatprep.subr.bf16.mxu0 %v2352_v1  ;;  %2037 = vmatprep.subr.bf16.mxu1 %v2352_v1 }
  0x37   : > { %2031 = vmatprep.mubr.msk.bf16.mxu0 %vm2353_vm0, %v2352_v1  ;;  %2039 = vmatprep.mubr.msk.bf16.mxu1 %vm2353_vm0, %v2352_v1 }
  0x39   : > { %2030 = vmatpush3.bf16.msra.mxu0 %v2212_v17  ;;  %2038 = vmatpush3.bf16.msra.mxu1 %v2213_v18 }
  0x3a   : > { %2043 = vmatprep.subr.bf16.mxu0 %v2352_v1  ;;  %2051 = vmatprep.subr.bf16.mxu1 %v2352_v1 }
  0x3c   : > { %2032 = vmatmul.mubr.msk.bf16.vlgmr.msra.gmra.mrb[12].mxu0 %vm491_vm1, %v459_v14  ;;  %2040 = vmatmul.mubr.msk.bf16.vlgmr.msra.gmra.mrb[12].mxu1 %vm491_vm1, %v459_v14 }
  0x3d   : > { %2044 = vmatpush3.bf16.msra.mxu0 %v2214_v19  ;;  %2052 = vmatpush3.bf16.msra.mxu1 %v2215_v20 }
  0x3e   : > { %2045 = vmatprep.subr.bf16.mxu0 %v2352_v1  ;;  %2053 = vmatprep.subr.bf16.mxu1 %v2352_v1 }
  0x3f   : > { %2047 = vmatprep.mubr.msk.bf16.mxu0 %vm2353_vm0, %v2352_v1  ;;  %2055 = vmatprep.mubr.msk.bf16.mxu1 %vm2353_vm0, %v2352_v1 }
  0x41   : > { %2046 = vmatpush3.bf16.msra.mxu0 %v2216_v21  ;;  %2054 = vmatpush3.bf16.msra.mxu1 %v2217_v22 }
  0x42   : > { %2059 = vmatprep.subr.bf16.mxu0 %v2352_v1  ;;  %2067 = vmatprep.subr.bf16.mxu1 %v2352_v1 }
  0x44   : > { %2048 = vmatmul.mubr.msk.bf16.vlgmr.msra.gmra.mrb[16].mxu0 %vm491_vm1, %v460_v23  ;;  %2056 = vmatmul.mubr.msk.bf16.vlgmr.msra.gmra.mrb[16].mxu1 %vm491_vm1, %v460_v23 }
  0x45   : > { %2060 = vmatpush3.bf16.msra.mxu0 %v2218_v24  ;;  %2063 = vmatprep.mubr.msk.bf16.mxu0 %vm2353_vm0, %v2352_v1 }
  0x46   : > { %2061 = vmatprep.subr.bf16.mxu0 %v2352_v1  ;;  %2068 = vmatpush3.bf16.msra.mxu1 %v2219_v25 }
  0x47   : > { %2071 = vmatprep.mubr.msk.bf16.mxu1 %vm2353_vm0, %v2352_v1  ;;  %2069 = vmatprep.subr.bf16.mxu1 %v2352_v1 }
  0x49   : > { %2062 = vmatpush3.bf16.msra.mxu0 %v2220_v26 }
  0x4a   : > { %2070 = vmatpush3.bf16.msra.mxu1 %v2221_v27  ;;  %2075 = vmatprep.subr.bf16.mxu0 %v2352_v1 }
  0x4b   : > { %2081 = vmatprep.subr.bf16.mxu1 %v2352_v1 }
  0x4c   : > { %2064 = vmatmul.mubr.msk.bf16.vlgmr.msra.gmra.mrb[20].mxu0 %vm491_vm1, %v460_v23 }
  0x4d   : > { %2072 = vmatmul.mubr.msk.bf16.vlgmr.msra.gmra.mrb[20].mxu1 %vm491_vm1, %v460_v23  ;;  %2077 = vmatprep.mubr.msk.bf16.mxu0 %vm2353_vm0, %v2352_v1 }
  0x4e   : > { %2083 = vmatprep.mubr.msk.bf16.mxu1 %vm2353_vm0, %v2352_v1 }
  0xf7   : > { %v529_v28 = vpop.f32.mrb[0].mxu0  ;;  %v581_v30 = vpop.f32.mrb[0].mxu1 }
  0xf8   : > { %v1985_v29 = vpop.f32.mrb[1].mxu0  ;;  %v1993_v32 = vpop.f32.mrb[1].mxu1  ;;  %v691_v57 = vpack.c.bf16 %v529_v28, %v529_v28  ;;  %v692_v61 = vpack.c.bf16 %v581_v30, %v581_v30 }
  0xf9   : > { %v532_v31 = vpop.f32.mrb[2].mxu0  ;;  %v584_v34 = vpop.f32.mrb[2].mxu1 }
  0xfa   : > { %v1986_v33 = vpop.f32.mrb[3].mxu0  ;;  %v1994_v35 = vpop.f32.mrb[3].mxu1  ;;  %v2354_v34 = vmov 0  }
  0xfb   : > { %v461_v33 = vld [vmem:[%s454_s12] sm:$0x3]  ;;  %s1923_s12 = sshll.u32 %s2342_s16, 9 }
  0xfc   : > { %vm462_vm4 = vnez %v461_v33  ;;  %s2726_s1 = scalar_lea.hbm %s2820_s10, %s1923_s12 }
  0xfd   : > { %v1342_v35 = vsel %vm462_vm4, 16843009, %v2354_v34 }
  0xff   : > { %v633_v36 = vpop.f32.mrb[4].mxu0  ;;  %v685_v38 = vpop.f32.mrb[4].mxu1 }
 0x100   : > { %v2001_v37 = vpop.f32.mrb[5].mxu0  ;;  %v2009_v40 = vpop.f32.mrb[5].mxu1  ;;  %v693_v7 = vpack.c.bf16 %v633_v36, %v633_v36  ;;  %v694_v8 = vpack.c.bf16 %v685_v38, %v685_v38  ;;  %v1343_v36 = vunpack.c.0.s8 %v1342_v35 }
 0x101   : > { %v636_v39 = vpop.f32.mrb[6].mxu0  ;;  %v688_v42 = vpop.f32.mrb[6].mxu1 }
 0x102   : > { %v2002_v41 = vpop.f32.mrb[7].mxu0  ;;  %v2010_v43 = vpop.f32.mrb[7].mxu1  ;;  %vm2662_vm5 = vcmp.ne.s32.totalorder %v1343_v36, 0 }
 0x107   : > { %v760_v44 = vpop.f32.mrb[8].mxu0  ;;  %v812_v46 = vpop.f32.mrb[8].mxu1 }
 0x108   : > { %v922_v45 = vpack.c.bf16 %v760_v44, %v760_v44  ;;  %v2017_v47 = vpop.f32.mrb[9].mxu0  ;;  %v923_v48 = vpack.c.bf16 %v812_v46, %v812_v46  ;;  %v2025_v50 = vpop.f32.mrb[9].mxu1 }
 0x109   : > { %v763_v49 = vpop.f32.mrb[10].mxu0  ;;  %v815_v53 = vpop.f32.mrb[10].mxu1 }
 0x10a   : > { %v1162_v51 = vsel %vm1157_vm2, %v922_v45, 0  ;;  %v2018_v52 = vpop.f32.mrb[11].mxu0  ;;  %v1208_v54 = vsel %vm1157_vm2, %v923_v48, 0  ;;  %v2026_v55 = vpop.f32.mrb[11].mxu1 }
 0x10b   : > { %2076 = vmatpush3.bf16.xpose.msra.mxu0 %v1162_v51  ;;  %2082 = vmatpush3.bf16.xpose.msra.mxu1 %v1208_v54 }
 0x10c   : > { %2087 = vmatprep.subr.bf16.mxu0 %v2352_v1  ;;  %2093 = vmatprep.subr.bf16.mxu1 %v2352_v1 }
 0x10f   : > { %v864_v56 = vpop.f32.mrb[12].mxu0  ;;  %v916_v59 = vpop.f32.mrb[12].mxu1 }
 0x110   : > { %v924_v58 = vpack.c.bf16 %v864_v56, %v864_v56  ;;  %v2033_v60 = vpop.f32.mrb[13].mxu0  ;;  %v925_v62 = vpack.c.bf16 %v916_v59, %v916_v59  ;;  %v2041_v0 = vpop.f32.mrb[13].mxu1 }
 0x111   : > { %v867_v63 = vpop.f32.mrb[14].mxu0  ;;  %v919_v4 = vpop.f32.mrb[14].mxu1 }
 0x112   : > { %v1254_v2 = vsel %vm1157_vm2, %v924_v58, 0  ;;  %v2034_v3 = vpop.f32.mrb[15].mxu0  ;;  %2078 = vmatmul.mubr.msk.bf16.vlgmr.msra.gmra.mrb[24].mxu0 %vm1157_vm2, %v691_v57  ;;  %v1300_v5 = vsel %vm1157_vm2, %v925_v62, 0  ;;  %2084 = vmatmul.mubr.msk.bf16.vlgmr.msra.gmra.mrb[24].mxu1 %vm1157_vm2, %v692_v61  ;;  %v2042_v6 = vpop.f32.mrb[15].mxu1 }
 0x113   : > { %2088 = vmatpush3.bf16.xpose.msra.mxu0 %v1254_v2  ;;  %2094 = vmatpush3.bf16.xpose.msra.mxu1 %v1300_v5 }
 0x114   : > { %2089 = vmatprep.mubr.msk.bf16.mxu0 %vm2353_vm0, %v2352_v1  ;;  %2095 = vmatprep.mubr.msk.bf16.mxu1 %vm2353_vm0, %v2352_v1 }
 0x115   : > { %2099 = vmatprep.subr.bf16.mxu0 %v2352_v1  ;;  %2105 = vmatprep.subr.bf16.mxu1 %v2352_v1 }
 0x117   : > { %v991_v9 = vpop.f32.mrb[16].mxu0  ;;  %v1043_v13 = vpop.f32.mrb[16].mxu1 }
 0x118   : > { %v1153_v10 = vpack.c.bf16 %v991_v9, %v991_v9  ;;  %v2049_v11 = vpop.f32.mrb[17].mxu0  ;;  %v1154_v16 = vpack.c.bf16 %v1043_v13, %v1043_v13  ;;  %v2057_v17 = vpop.f32.mrb[17].mxu1 }
 0x119   : > { %v994_v12 = vpop.f32.mrb[18].mxu0  ;;  %v1046_v18 = vpop.f32.mrb[18].mxu1 }
 0x11a   : > { %2090 = vmatmul.mubr.msk.bf16.vlgmr.msra.gmra.mrb[28].mxu0 %vm1157_vm2, %v693_v7  ;;  %2096 = vmatmul.mubr.msk.bf16.vlgmr.msra.gmra.mrb[28].mxu1 %vm1157_vm2, %v694_v8  ;;  %v1408_v14 = vsel %vm1406_vm3, %v1153_v10, 0  ;;  %v2050_v15 = vpop.f32.mrb[19].mxu0  ;;  %v1454_v19 = vsel %vm1406_vm3, %v1154_v16, 0  ;;  %v2058_v20 = vpop.f32.mrb[19].mxu1 }
 0x11b   : > { %2101 = vmatprep.mubr.msk.bf16.mxu0 %vm2353_vm0, %v2352_v1  ;;  %2107 = vmatprep.mubr.msk.bf16.mxu1 %vm2353_vm0, %v2352_v1 }
 0x11c   : > { %2100 = vmatpush3.bf16.msra.mxu0 %v1408_v14  ;;  %2106 = vmatpush3.bf16.msra.mxu1 %v1454_v19 }
 0x11d   : > { %2111 = vmatprep.subr.bf16.mxu0 %v2352_v1  ;;  %2117 = vmatprep.subr.bf16.mxu1 %v2352_v1 }
 0x11f   : > { %v1095_v21 = vpop.f32.mrb[20].mxu0 }
 0x120   : > { %v1147_v22 = vpop.f32.mrb[20].mxu1  ;;  %v1155_v23 = vpack.c.bf16 %v1095_v21, %v1095_v21  ;;  %v2065_v24 = vpop.f32.mrb[21].mxu0 }
 0x121   : > { %v1156_v25 = vpack.c.bf16 %v1147_v22, %v1147_v22  ;;  %v2073_v26 = vpop.f32.mrb[21].mxu1  ;;  %v1098_v27 = vpop.f32.mrb[22].mxu0 }
 0x122   : > { %v1150_v28 = vpop.f32.mrb[22].mxu1  ;;  %v2653_v29 = vsel %vm1406_vm3, %v1155_v23, 0  ;;  %v2066_v30 = vpop.f32.mrb[23].mxu0 }
 0x123   : > { %v2656_v31 = vsel %vm1406_vm3, %v1156_v25, 0  ;;  %v2074_v32 = vpop.f32.mrb[23].mxu1 }
 0x1e5   : > { %v1198_v38 = vpop.f32.mrb[24].mxu0  ;;  %v1244_v40 = vpop.f32.mrb[24].mxu1 }
 0x1e6   : > { %v1347_v39 = vsel %vm2662_vm5, -10000.0, %v1198_v38  ;;  %v2079_v41 = vpop.f32.mrb[25].mxu0  ;;  %v2085_v42 = vpop.f32.mrb[25].mxu1  ;;  %v1348_v45 = vsel %vm2662_vm5, -10000.0, %v1244_v40 }
 0x1e7   : > { %v1201_v43 = vpop.f32.mrb[26].mxu0  ;;  %v1351_v44 = vsel %vm1157_vm2, %v1347_v39, -inf  ;;  %v1247_v46 = vpop.f32.mrb[26].mxu1  ;;  %v1354_v49 = vsel %vm1157_vm2, %v1348_v45, -inf }
 0x1e8   : > { %1352 = vmax.xlane.f32.xlu0 %v1351_v44  ;;  %v2080_v47 = vpop.f32.mrb[27].mxu0  ;;  %v2086_v48 = vpop.f32.mrb[27].mxu1 }
 0x1ec   : > { %1355 = vmax.xlane.f32.xlu0 %v1354_v49 }
 0x1ed   : > { %v1290_v50 = vpop.f32.mrb[28].mxu0  ;;  %v1336_v52 = vpop.f32.mrb[28].mxu1 }
 0x1ee   : > { %v1349_v51 = vsel %vm2662_vm5, -10000.0, %v1290_v50  ;;  %v2091_v53 = vpop.f32.mrb[29].mxu0  ;;  %v2097_v54 = vpop.f32.mrb[29].mxu1  ;;  %v1350_v57 = vsel %vm2662_vm5, -10000.0, %v1336_v52 }
 0x1ef   : > { %v1293_v55 = vpop.f32.mrb[30].mxu0  ;;  %v1357_v56 = vsel %vm1157_vm2, %v1349_v51, -inf  ;;  %v1339_v58 = vpop.f32.mrb[30].mxu1  ;;  %v1360_v61 = vsel %vm1157_vm2, %v1350_v57, -inf }
 0x1f0   : > { %1358 = vmax.xlane.f32.xlu1 %v1357_v56  ;;  %v2092_v59 = vpop.f32.mrb[31].mxu0  ;;  %v2098_v60 = vpop.f32.mrb[31].mxu1 }
 0x1f4   : > { %1361 = vmax.xlane.f32.xlu1 %v1360_v61 }
 0x275   : > { %v1353_v62 = vpop.xlane.xlu0 %1352 }
 0x276   : > { %v1363_v63 = vsub.f32 %v1347_v39, %v1353_v62  ;;  %v2223_v39 = vld [vmem:[%s2817_s7 + $0x8] sm:$0xff]  }
 0x278   : > { %v1367_v0 = vmul.f32 1.442695, %v1363_v63 }
 0x279   : > { %v1356_v2 = vpop.xlane.xlu0 %1355 }
 0x27a   : > { %2224 = vpow2.f32 %v1367_v0  ;;  %v1364_v3 = vsub.f32 %v1348_v45, %v1356_v2 }
 0x27c   : > { %v1369_v4 = vmul.f32 1.442695, %v1364_v3 }
 0x27d   : > { %v1359_v5 = vpop.xlane.xlu1 %1358 }
 0x27e   : > { %2226 = vpow2.f32 %v1369_v4  ;;  %v1365_v6 = vsub.f32 %v1349_v51, %v1359_v5 }
 0x280   : > { %v1371_v7 = vmul.f32 1.442695, %v1365_v6 }
 0x281   : > { %v1362_v8 = vpop.xlane.xlu1 %1361 }
 0x282   : > { %2228 = vpow2.f32 %v1371_v7  ;;  %v1366_v9 = vsub.f32 %v1350_v57, %v1362_v8 }
 0x284   : > { %v2225_v10 = vpop.eup %2224  ;;  %v1373_v11 = vmul.f32 1.442695, %v1366_v9 }
 0x285   : > { %v1375_v12 = vsel %vm1157_vm2, %v2225_v10, 0.0 }
 0x286   : > { %2230 = vpow2.f32 %v1373_v11  ;;  %1376 = vadd.xlane.f32.xlu0 %v1375_v12 }
 0x288   : > { %v2227_v13 = vpop.eup %2226 }
 0x289   : > { %v1378_v14 = vsel %vm1157_vm2, %v2227_v13, 0.0 }
 0x28a   : > { %1379 = vadd.xlane.f32.xlu1 %v1378_v14 }
 0x28c   : > { %v2229_v15 = vpop.eup %2228 }
 0x28d   : > { %v1381_v16 = vsel %vm1157_vm2, %v2229_v15, 0.0 }
 0x28e   : > { %1382 = vadd.xlane.f32.xlu0 %v1381_v16 }
 0x290   : > { %v2231_v17 = vpop.eup %2230 }
 0x291   : > { %v1384_v18 = vsel %vm1157_vm2, %v2231_v17, 0.0 }
 0x292   : > { %1385 = vadd.xlane.f32.xlu1 %v1384_v18 }
 0x313   : > { %v1377_v19 = vpop.xlane.xlu0 %1376 }
 0x314   : > { %2232 = vrcp.f32 %v1377_v19 }
 0x317   : > { %v1380_v20 = vpop.xlane.xlu1 %1379 }
 0x318   : > { %2234 = vrcp.f32 %v1380_v20 }
 0x31b   : > { %v1383_v21 = vpop.xlane.xlu0 %1382 }
 0x31c   : > { %2236 = vrcp.f32 %v1383_v21 }
 0x31e   : > { %v2233_v22 = vpop.eup %2232 }
 0x31f   : > { %v1391_v23 = vmul.f32 %v2233_v22, %v2225_v10  ;;  %v1386_v24 = vpop.xlane.xlu1 %1385 }
 0x320   : > { %2238 = vrcp.f32 %v1386_v24 }
 0x321   : > { %v1399_v25 = vpack.c.bf16 %v1391_v23, %v1391_v23  ;;  %1395 = vst.msk [vmem:[%s2686_s20] sm:$0xff] %vm1157_vm2, %v1391_v23 }
 0x322   : > { %v2235_v26 = vpop.eup %2234 }
 0x323   : > { %v1392_v27 = vmul.f32 %v2235_v26, %v2227_v13  ;;  %2102 = vmatmul.mubr.msk.bf16.vlgmr.msra.gmra.mrb[32].mxu0 %vm1157_vm2, %v1399_v25 }
 0x324   : > { %2112 = vmatpush3.bf16.msra.mxu0 %v2653_v29  ;;  %2113 = vmatprep.mubr.msk.bf16.mxu0 %vm2353_vm0, %v2352_v1 }
 0x325   : > { %v1400_v28 = vpack.c.bf16 %v1392_v27, %v1392_v27  ;;  %2123 = vmatprep.subr.bf16.mxu0 %v2352_v1  ;;  %1396 = vst.msk [vmem:[%s2686_s20 + $0x8] sm:$0xff] %vm1157_vm2, %v1392_v27 }
 0x326   : > { %v2237_v30 = vpop.eup %2236 }
 0x327   : > { %v1393_v32 = vmul.f32 %v2237_v30, %v2229_v15  ;;  %2108 = vmatmul.mubr.msk.bf16.vlgmr.msra.gmra.mrb[32].mxu1 %vm1157_vm2, %v1400_v28 }
 0x328   : > { %2118 = vmatpush3.bf16.msra.mxu1 %v2656_v31  ;;  %2119 = vmatprep.mubr.msk.bf16.mxu1 %vm2353_vm0, %v2352_v1  ;;  %v2222_v31 = vld [vmem:[%s2817_s7] sm:$0xff]  }
 0x329   : > { %v1401_v33 = vpack.c.bf16 %v1393_v32, %v1393_v32  ;;  %1397 = vst.msk [vmem:[%s2686_s20 + $0x10] sm:$0xff] %vm1157_vm2, %v1393_v32 }
 0x32a   : > { %v2239_v29 = vpop.eup %2238 }
 0x32b   : > { %v1394_v34 = vmul.f32 %v2239_v29, %v2231_v17  ;;  %2114 = vmatmul.mubr.msk.bf16.vlgmr.msra.gmra.mrb[36].mxu0 %vm1157_vm2, %v1401_v33 }
 0x32c   : > { %2127 = vmatprep.mubr.msk.bf16.mxu0 %vm2353_vm0, %v2352_v1  ;;  %2124 = vmatpush3.bf16.msra.mxu0 %v2222_v31 }
 0x32d   : > { %v1402_v35 = vpack.c.bf16 %v1394_v34, %v1394_v34  ;;  %1398 = vst.msk [vmem:[%s2686_s20 + $0x18] sm:$0xff] %vm1157_vm2, %v1394_v34  ;;  %2125 = vmatprep.subr.bf16.mxu0 %v2352_v1 }
 0x32f   : > { %2120 = vmatmul.mubr.msk.bf16.vlgmr.msra.gmra.mrb[36].mxu1 %vm1157_vm2, %v1402_v35 }
 0x330   : > { %2126 = vmatpush3.bf16.msra.mxu0 %v2223_v39 }
 0x3f6   : > { %v1444_v36 = vpop.f32.mrb[32].mxu0 }
 0x3f7   : > { %1588 = vst.msk [vmem:[#allocation2] sm:$0xff] %vm1157_vm2, %v1444_v36  ;;  %v2103_v37 = vpop.f32.mrb[33].mxu0 }
 0x3f8   : > { %v1447_v38 = vpop.f32.mrb[34].mxu0 }
 0x3f9   : > { %v2104_v40 = vpop.f32.mrb[35].mxu0 }
 0x3fa   : > { %v1490_v41 = vpop.f32.mrb[32].mxu1 }
 0x3fb   : > { %1590 = vrot.lane.b32.xlu0 %v1490_v41, %s2355_s28  ;;  %v2109_v42 = vpop.f32.mrb[33].mxu1 }
 0x3fc   : > { %v1493_v43 = vpop.f32.mrb[34].mxu1 }
 0x3fd   : > { %v2110_v44 = vpop.f32.mrb[35].mxu1 }
 0x3fe   : > { %v1536_v45 = vpop.f32.mrb[36].mxu0 }
 0x3ff   : > { %1596 = vrot.lane.b32.xlu1 %v1536_v45, %s2356_s29  ;;  %v2115_v46 = vpop.f32.mrb[37].mxu0  ;;  %s2358_s29 = smov [#allocation5]  }
 0x400   : > { %v1539_v47 = vpop.f32.mrb[38].mxu0 }
 0x401   : > { %v2116_v48 = vpop.f32.mrb[39].mxu0 }
 0x402   : > { %v1582_v49 = vpop.f32.mrb[36].mxu1 }
 0x403   : > { %v2121_v50 = vpop.f32.mrb[37].mxu1  ;;  %1602 = vrot.lane.b32.xlu1 %v1582_v49, %s2357_s30  ;;  %s2244_s30 = sshll.u32 %s2358_s29, 4  ;;  %s2245_s30 = int_to_ptr.vmem [resolvable:$false] %s2244_s30 }
 0x404   : > { %v1585_v1 = vpop.f32.mrb[38].mxu1  ;;  %s2246_s20 = scalar_lea.vmem %s2245_s30, 1024  ;;  %p2247_p1 = scmp.lt.s32.totalorder %s2721_s11, %s2245_s30 }
 0x405   : > { %v2122_v51 = vpop.f32.mrb[39].mxu1  ;;  %p2248_p2 = scmp.lt.s32.totalorder %s2246_s20, %s2240_s0 }
 0x407   : > { %p2249_p3 = por %p2248_p2, %p2247_p1 }
 0x409   : > { %p2250_p5 = pnand %p2249_p3, %p2243_p0 }
 0x46d   : > { %v1591_v52 = vpop.permute.xlu0 %1590 }
 0x46e   : > { %1594 = vst.msk [vmem:[#allocation2] sm:$0xff] %vm1593_vm6, %v1591_v52 }
 0x471   : > { %v1597_v53 = vpop.permute.xlu1 %1596 }
 0x472   : > { %1600 = vst.msk [vmem:[#allocation2] sm:$0xff] %vm1599_vm7, %v1597_v53 }
 0x475   : > { %v1603_v54 = vpop.permute.xlu1 %1602 }
 0x476   : > { %1606 = vst.msk [vmem:[#allocation2] sm:$0xff] %vm1605_vm8, %v1603_v54 }
 0x47d   : > { %v1607_v55 = vld [vmem:[#allocation2] sm:$0xff] }
 0x47e   : > { %v1608_v56 = vpack.c.bf16 %v1607_v55, %v1607_v55 }
 0x480   : > { %2128 = vmatmul.mubr.msk.bf16.vlgmr.msra.gmra.mrb[40].mxu0 %vm491_vm1, %v1608_v56 }
 0x481   : > { %2253 = shalt.err (!%p2250_p5)
}
 0x482   : > { %s2254_s12 = scalar_lea.hbm %s2726_s1, 512  ;;  %s2258_s29 = scalar_lea.hbm %s2820_s10, 1024 }
 0x483   : > { %p2255_p6 = scmp.ne.s32.totalorder %s2726_s1, %s2254_s12  ;;  %p2259_p10 = scmp.lt.u32.totalorder %s2726_s1, %s2820_s10 }
 0x484   : > { %p2260_p11 = scmp.lt.u32.totalorder %s2258_s29, %s2254_s12  ;;  %p2262_p13 = scmp.lt.u32.totalorder %s2254_s12, %s2726_s1 }
 0x485   : > { %p2256_p7 = pnand %p2255_p6, %p2456_p4 }
 0x486   : > { %p2261_p12 = por %p2260_p11, %p2259_p10 }
 0x487   : > { %p2257_p9 = pneg %p2256_p7 }
 0x488   : > { %p2263_p0 = por %p2262_p13, %p2261_p12 }
 0x48a   : > { %p2264_p1 = pnand %p2263_p0, %p2257_p9 }
 0x48c   : > { %2267 = shalt.err (!%p2264_p1)
}
 0x48d   : > { %s2359_s0 = smov 128   ;;  %s2835_s20 = scalar_lea.sflag [#allocation6], %s2683_s22  ;;  %v1912_v57 = vld [vmem:[%s2818_s8] ss:$0 sm:$0xff] }
 0x48e   : > { %2132 = dma.vmem_to_hbm [thread:$0]  (%p2456_p4), %s2721_s11, 512, %s2726_s1, %s2835_s20, %s2359_s0, %s2359_s0, %s2355_s28  }
 0x48f   : > { %s1862_s24 = sshll.u32 %s2683_s22, 3  ;;  %s1918_s12 = sshll.u32 %s2342_s16, 7 }
 0x490   : > { %s425_s29 = scalar_lea.vmem [#allocation3], %s1862_s24  ;;  %s2761_s4 = scalar_lea.hbm %s2819_s9, %s1918_s12 }
 0x491   : > { %s1696_s30 = sshll.u32 %s425_s29, 4  ;;  %s1677_s16 = scalar_lea.sflag [#allocation4], %s2683_s22  ;;  %s2763_s30 = int_to_ptr.vmem [resolvable:$true] %s1696_s30 }
 0x492   : > { %s2268_s28 = scalar_lea.vmem %s2763_s30, 128  ;;  %s2360_s11 = smov [#allocation3]  }
 0x493   : > { %p2269_p2 = scmp.ne.s32.totalorder %s2763_s30, %s2268_s28  ;;  %s2272_s1 = sshll.u32 %s2360_s11, 4  ;;  %s2273_s1 = int_to_ptr.vmem [resolvable:$false] %s2272_s1 }
 0x494   : > { %s2274_s2 = scalar_lea.vmem %s2273_s1, 256  ;;  %p2275_p6 = scmp.lt.s32.totalorder %s2763_s30, %s2273_s1 }
 0x495   : > { %p2270_p3 = pnand %p2269_p2, %p2456_p4  ;;  %p2276_p7 = scmp.lt.s32.totalorder %s2274_s2, %s2268_s28 }
 0x497   : > { %p2271_p5 = pneg %p2270_p3  ;;  %p2277_p9 = por %p2276_p7, %p2275_p6 }
 0x499   : > { %p2278_p10 = pnand %p2277_p9, %p2271_p5 }
 0x553   : > { %v1669_v58 = vpop.f32.mrb[40].mxu0 }
 0x554   : > { %v1670_v59 = vadd.f32 %v1912_v57, %v1669_v58  ;;  %v2129_v60 = vpop.f32.mrb[41].mxu0 }
 0x555   : > { %v1672_v61 = vpop.f32.mrb[42].mxu0 }
 0x556   : > { %v2130_v62 = vpop.f32.mrb[43].mxu0  ;;  %1675 = vst.msk [vmem:[%s425_s29] sm:$0xff] %vm491_vm1, %v1670_v59 }
 0x557   : > { %2281 = shalt.err (!%p2278_p10)
}
 0x558   : > { %s2282_s3 = scalar_lea.hbm %s2761_s4, 128  ;;  %s2286_s20 = scalar_lea.hbm %s2819_s9, 256 }
 0x559   : > { %p2283_p11 = scmp.ne.s32.totalorder %s2761_s4, %s2282_s3  ;;  %p2287_p0 = scmp.lt.u32.totalorder %s2761_s4, %s2819_s9 }
 0x55a   : > { %p2288_p1 = scmp.lt.u32.totalorder %s2286_s20, %s2282_s3  ;;  %p2290_p3 = scmp.lt.u32.totalorder %s2282_s3, %s2761_s4 }
 0x55b   : > { %p2284_p12 = pnand %p2283_p11, %p2456_p4 }
 0x55c   : > { %p2289_p2 = por %p2288_p1, %p2287_p0 }
 0x55d   : > { %p2285_p13 = pneg %p2284_p12 }
 0x55e   : > { %p2291_p5 = por %p2290_p3, %p2289_p2 }
 0x560   : > { %p2292_p6 = pnand %p2291_p5, %p2285_p13 }
 0x562   : > { %2295 = shalt.err (!%p2292_p6)
}
 0x563   : > { %2131 = dma.vmem_to_hbm [thread:$0]  (%p2456_p4), %s2763_s30, 128, %s2761_s4, %s1677_s16  }
 0x564 PF: > { %p2142_p7 = scmp.ge.s32.totalorder %s2350_s18, 2  ;;  %s1725_s27 = sand.u32 1, %s2330_s13  }
 0x565   : > { %s1726_s12 = scalar_lea.sflag [#allocation4], %s1725_s27 }
 0x566   : > { %p2136_p9 = pnand %p2142_p7, %p2463_p8 }
 0x568   : > { %2321 = dma.done.wait (!%p2136_p9), %s1726_s12, 128  }
 0x569   : > { %2323 = vsyncadd (!%p2136_p9), %s1726_s12, 4294967168  ;;  %s1735_s29 = scalar_lea.sflag [#allocation6], %s1725_s27 }
 0x56a   : > { %2325 = dma.done.wait (!%p2136_p9), %s1735_s29, 512  }
 0x56b   : > { %2327 = vsyncadd (!%p2136_p9), %s1735_s29, 4294966784  ;;  %s27_s18 = sadd.s32 1, %s2350_s18   ;;  %s2836_s13 = smov %s2334_s14 }
 0x56c   : > { %p24_p10 = scmp.ge.s32.totalorder %s27_s18, 4   ;;  %s2837_s14 = smov %s2338_s15 }
 0x56d   : > { %s2838_s15 = smov %s2469_s26  ;;  %s2839_s16 = smov %s2346_s17 }
 0x56e   : > { %s2840_s17 = smov %s2842_s21  ;;  %26 = sbr.rel (!%p24_p10) target bundleno = 12 (0xc), region = 117 }
 0x575   :  { %1740 = vsyncpa [#allocation4], 1 }
 0x576   :  { %1742 = vsyncpa [#allocation4 + $0x1], 1 }
 0x577   :  { %1743 = vsyncpa [#allocation6], 1 }
 0x578   :  { %1745 = vsyncpa [#allocation6 + $0x1], 1 }

</bundles_post_ra>
